<compile_context>
chip_gen: v7x
topology: tpu7x:2x2x1
jax: 0.10.0
libtpu: 0.0.40
codegen_flags: <defaults>
</compile_context>

<pallas_src>
import math

import jax
import jax.numpy as jnp
from jax.experimental import pallas as pl
from jax.experimental.pallas import tpu as pltpu

_LOG_2PI = math.log(2.0 * math.pi)
_SOFTPLUS_THRESHOLD = 20.0
_TILE_BYTES = 2 << 20          # target bytes per input block (~2 MiB, v7x-safe)
_MAX_LANE_WIDTH = 2048         # cap on the lane-dense last dim


def _cnps_sum_kernel(mean_ref, log_sigma_ref, target_ref, out_ref, acc_ref):
    """Accumulates sum[(x-mu)^2/softplus(ls) + log softplus(ls)] per batch row."""
    mt = pl.program_id(1)

    @pl.when(mt == 0)
    def _init():
        acc_ref[...] = jnp.zeros_like(acc_ref)

    mu = mean_ref[...].astype(jnp.float32)        # (TM, K)
    ls = log_sigma_ref[...].astype(jnp.float32)   # (TM, K)
    x = target_ref[...].astype(jnp.float32)       # (TM, K)

    # softplus with PyTorch's threshold=20 behaviour (numerically stable).
    s = jnp.where(
        ls > _SOFTPLUS_THRESHOLD,
        ls,
        jnp.log1p(jnp.exp(jnp.minimum(ls, _SOFTPLUS_THRESHOLD))),
    )

    diff = x - mu
    term = diff * diff / s + jnp.log(s)           # per-element Mahalanobis + logdet

    # Elementwise accumulate — no per-step cross-lane reduce.
    acc_ref[...] += term

    @pl.when(mt == pl.num_programs(1) - 1)
    def _finalize():
        # Single cross-lane/sublane reduction per batch row.
        out_ref[...] = jnp.zeros((1, 1), jnp.float32) + jnp.sum(acc_ref[...])


def _pick_lane_width(n: int) -> int:
    """Largest multiple-of-128 divisor of n (capped); fall back to full n."""
    best = None
    k = 128
    while k <= min(n, _MAX_LANE_WIDTH):
        if n % k == 0:
            best = k
        k += 128
    return best if best is not None else n


def _pick_row_tile(m: int, k: int, elem_bytes: int) -> int:
    """Largest row tile that divides m, is a multiple of 8 (or == m), and keeps
    a (tm, k) input block under ~_TILE_BYTES."""
    cap = max(1, _TILE_BYTES // max(1, k * elem_bytes))
    if m <= cap:
        return m
    best = 1
    t = 8
    while t <= cap:
        if m % t == 0:
            best = t
        t += 8
    return best


def cnps_loss(outputs: jax.Array, targets: jax.Array) -> jax.Array:
    """Pallas implementation of CNPsLoss.forward(outputs, targets)."""
    assert outputs.shape == targets.shape
    assert outputs.ndim >= 2
    b = outputs.shape[0]
    c2 = outputs.shape[1]
    assert c2 % 2 == 0, "channel dim must be even (chunked into mean / log_sigma)"
    c = c2 // 2

    mean_shape = (b, c) + tuple(outputs.shape[2:])
    d = mean_shape[-1]                       # MVN event dim (last dim)
    chw = 1
    for sdim in mean_shape[1:]:
        chw *= sdim                          # elements per (batch, half) chunk
    num_rows = (b * chw) // d                # number of MVN "batch" rows

    # Lane-dense factorization of the per-(batch, half) payload: chw = m * k.
    k = _pick_lane_width(chw)
    m = chw // k
    elem_bytes = jnp.dtype(outputs.dtype).itemsize
    tm = _pick_row_tile(m, k, elem_bytes)
    n_mt = m // tm

    # Free (contiguous) reshapes — no channel-slice copies, no dtype cast.
    outputs_r = outputs.reshape(b, 2, m, k)
    targets_r = targets.reshape(b, 2, m, k)

    blk = (None, None, tm, k)                # leading dims squeezed in-kernel

    per_batch = pl.pallas_call(
        _cnps_sum_kernel,
        out_shape=jax.ShapeDtypeStruct((b, 1, 1), jnp.float32),
        grid_spec=pltpu.PrefetchScalarGridSpec(
            num_scalar_prefetch=0,
            grid=(b, n_mt),
            in_specs=[
                # mean half of `outputs` (channel-chunk 0) via index_map offset.
                pl.BlockSpec(blk, lambda bi, mi: (bi, 0, mi, 0)),
                # log_sigma half of `outputs` (channel-chunk 1).
                pl.BlockSpec(blk, lambda bi, mi: (bi, 1, mi, 0)),
                # target_value half of `targets`; its unused half is never streamed.
                pl.BlockSpec(blk, lambda bi, mi: (bi, 0, mi, 0)),
            ],
            out_specs=pl.BlockSpec((None, 1, 1), lambda bi, mi: (bi, 0, 0)),
            scratch_shapes=[pltpu.VMEM((tm, k), jnp.float32)],
        ),
        compiler_params=pltpu.CompilerParams(
            dimension_semantics=("parallel", "arbitrary"),
            vmem_limit_bytes=48 * 1024 * 1024,
        ),
    )(outputs_r, outputs_r, targets_r)

    # Tiny epilogue in XLA: combine per-batch partial sums + constants.
    total = jnp.sum(per_batch)
    return 0.5 * total / float(num_rows) + 0.5 * float(d) * _LOG_2PI


def _cnps_loss_ref(outputs, targets):
    """Pure-JAX reference for correctness checking."""
    c = outputs.shape[1] // 2
    mean = outputs[:, :c].astype(jnp.float32)
    log_sigma = outputs[:, c:].astype(jnp.float32)
    x = targets[:, :c].astype(jnp.float32)
    s = jax.nn.softplus(log_sigma)
    d = mean.shape[-1]
    lp = -0.5 * jnp.sum((x - mean) ** 2 / s + jnp.log(s), axis=-1) \
         - 0.5 * d * jnp.log(2.0 * jnp.pi)
    return -jnp.mean(lp)


if __name__ == "__main__":
    key = jax.random.PRNGKey(0)
    k1, k2 = jax.random.split(key)

    # outputs / targets: (B, 2C, H, D) = (2, 4, 16, 16)
    outputs = jax.random.normal(k1, (2, 4, 16, 16), dtype=jnp.float32)
    targets = jax.random.normal(k2, (2, 4, 16, 16), dtype=jnp.float32)

    loss = cnps_loss(outputs, targets)
    jax.block_until_ready(loss)

    ref = _cnps_loss_ref(outputs, targets)
    assert jnp.allclose(loss, ref, rtol=1e-5, atol=1e-5), (loss, ref)

    print("KERNEL_OK")
</pallas_src>

<mosaic_0001>
module attributes {stable_mosaic.version = 11 : i64} {
  func.func @_cnps_sum_kernel(%arg0: i32, %arg1: i32, %arg2: memref<1x1x1x512xf32, #tpu.memory_space<vmem>>, %arg3: memref<1x1x1x512xf32, #tpu.memory_space<vmem>>, %arg4: memref<1x1x1x512xf32, #tpu.memory_space<vmem>>, %arg5: memref<1x1x1xf32, #tpu.memory_space<vmem>>, %arg6: memref<1x512xf32, #tpu.memory_space<vmem>>) attributes {dimension_semantics = [#tpu.dimension_semantics<parallel>, #tpu.dimension_semantics<arbitrary>], iteration_bounds = array<i64: 2, 1>, scalar_prefetch = 0 : i64, scratch_operands = 1 : i64, tpu.core_type = #tpu.core_type<tc>, window_params = [{transform_indices = @transform_0, window_bounds = array<i64: 1, 1, 1, 512>}, {transform_indices = @transform_1, window_bounds = array<i64: 1, 1, 1, 512>}, {transform_indices = @transform_2, window_bounds = array<i64: 1, 1, 1, 512>}, {transform_indices = @transform_3, window_bounds = array<i64: 1, 1, 1>}]} {
    %c0_i32 = arith.constant 0 : i32
    %0 = arith.cmpi eq, %arg1, %c0_i32 : i32
    %1 = arith.extui %0 : i1 to i32
    %c0_i32_0 = arith.constant 0 : i32
    %2 = arith.cmpi ne, %1, %c0_i32_0 : i32
    scf.if %2 {
      %cst_19 = arith.constant 0.000000e+00 : f32
      %27 = vector.broadcast %cst_19 : f32 to vector<1x512xf32>
      %c0_20 = arith.constant 0 : index
      %c0_21 = arith.constant 0 : index
      %28 = vector.load %arg6[%c0_20, %c0_21] : memref<1x512xf32, #tpu.memory_space<vmem>>, vector<1x512xf32>
      tpu.vector_store %arg6[%c0_20, %c0_21], %27 {strides = array<i32>} : memref<1x512xf32, #tpu.memory_space<vmem>>, vector<1x512xf32>,
    } else {
    }
    %c0 = arith.constant 0 : index
    %c0_1 = arith.constant 0 : index
    %c0_2 = arith.constant 0 : index
    %c0_3 = arith.constant 0 : index
    %3 = vector.load %arg2[%c0, %c0_1, %c0_2, %c0_3] : memref<1x1x1x512xf32, #tpu.memory_space<vmem>>, vector<1x1x1x512xf32>
    %4 = vector.shape_cast %3 : vector<1x1x1x512xf32> to vector<1x512xf32>
    %c0_4 = arith.constant 0 : index
    %c0_5 = arith.constant 0 : index
    %c0_6 = arith.constant 0 : index
    %c0_7 = arith.constant 0 : index
    %5 = vector.load %arg3[%c0_4, %c0_5, %c0_6, %c0_7] : memref<1x1x1x512xf32, #tpu.memory_space<vmem>>, vector<1x1x1x512xf32>
    %6 = vector.shape_cast %5 : vector<1x1x1x512xf32> to vector<1x512xf32>
    %c0_8 = arith.constant 0 : index
    %c0_9 = arith.constant 0 : index
    %c0_10 = arith.constant 0 : index
    %c0_11 = arith.constant 0 : index
    %7 = vector.load %arg4[%c0_8, %c0_9, %c0_10, %c0_11] : memref<1x1x1x512xf32, #tpu.memory_space<vmem>>, vector<1x1x1x512xf32>
    %8 = vector.shape_cast %7 : vector<1x1x1x512xf32> to vector<1x512xf32>
    %cst = arith.constant 2.000000e+01 : f32
    %9 = vector.broadcast %cst : f32 to vector<1x512xf32>
    %10 = arith.cmpf ogt, %6, %9 : vector<1x512xf32>
    %cst_12 = arith.constant 2.000000e+01 : f32
    %11 = vector.broadcast %cst_12 : f32 to vector<1x512xf32>
    %12 = arith.minimumf %6, %11 : vector<1x512xf32>
    %13 = math.exp %12 : vector<1x512xf32>
    %14 = math.log1p %13 : vector<1x512xf32>
    %15 = arith.select %10, %6, %14 : vector<1x512xi1>, vector<1x512xf32>
    %16 = arith.subf %8, %4 : vector<1x512xf32>
    %17 = arith.mulf %16, %16 : vector<1x512xf32>
    %18 = arith.divf %17, %15 : vector<1x512xf32>
    %19 = math.log %15 : vector<1x512xf32>
    %20 = arith.addf %18, %19 : vector<1x512xf32>
    %c0_13 = arith.constant 0 : index
    %c0_14 = arith.constant 0 : index
    %21 = vector.load %arg6[%c0_13, %c0_14] : memref<1x512xf32, #tpu.memory_space<vmem>>, vector<1x512xf32>
    %22 = arith.addf %21, %20 : vector<1x512xf32>
    %c0_15 = arith.constant 0 : index
    %c0_16 = arith.constant 0 : index
    %23 = vector.load %arg6[%c0_15, %c0_16] : memref<1x512xf32, #tpu.memory_space<vmem>>, vector<1x512xf32>
    tpu.vector_store %arg6[%c0_15, %c0_16], %22 {strides = array<i32>} : memref<1x512xf32, #tpu.memory_space<vmem>>, vector<1x512xf32>,
    %c0_i32_17 = arith.constant 0 : i32
    %24 = arith.cmpi eq, %arg1, %c0_i32_17 : i32
    %25 = arith.extui %24 : i1 to i32
    %c0_i32_18 = arith.constant 0 : i32
    %26 = arith.cmpi ne, %25, %c0_i32_18 : i32
    scf.if %26 {
      %cst_19 = arith.constant 0.000000e+00 : f32
      %27 = vector.broadcast %cst_19 : f32 to vector<1x1xf32>
      %c0_20 = arith.constant 0 : index
      %c0_21 = arith.constant 0 : index
      %28 = vector.load %arg6[%c0_20, %c0_21] : memref<1x512xf32, #tpu.memory_space<vmem>>, vector<1x512xf32>
      %29 = vector.shape_cast %28 : vector<1x512xf32> to vector<1x1x512xf32>
      %cst_22 = arith.constant dense<0.000000e+00> : vector<1xf32>
      %30 = vector.multi_reduction <add>, %29, %cst_22 [1, 2] : vector<1x1x512xf32> to vector<1xf32>
      %31 = vector.shape_cast %30 : vector<1xf32> to vector<1x1x1xf32>
      %32 = vector.extract %31[0, 0, 0] : f32 from vector<1x1x1xf32>
      %33 = vector.broadcast %32 : f32 to vector<1x1xf32>
      %34 = arith.addf %27, %33 : vector<1x1xf32>
      %c0_23 = arith.constant 0 : index
      %c0_24 = arith.constant 0 : index
      %c0_25 = arith.constant 0 : index
      %35 = vector.load %arg5[%c0_23, %c0_24, %c0_25] : memref<1x1x1xf32, #tpu.memory_space<vmem>>, vector<1x1x1xf32>
      %36 = vector.shape_cast %35 : vector<1x1x1xf32> to vector<1x1xf32>
      %37 = vector.shape_cast %34 : vector<1x1xf32> to vector<1x1x1xf32>
      tpu.vector_store %arg5[%c0_23, %c0_24, %c0_25], %37 {strides = array<i32>} : memref<1x1x1xf32, #tpu.memory_space<vmem>>, vector<1x1x1xf32>,
    } else {
    }
    return
  }
  func.func @transform_0(%arg0: i32, %arg1: i32) -> (i32, i32, i32, i32) {
    %c0_i32 = arith.constant 0 : i32
    %c0_i32_0 = arith.constant 0 : i32
    %c0_i32_1 = arith.constant 0 : i32
    return %arg0, %c0_i32, %arg1, %c0_i32_0 : i32, i32, i32, i32
  }
  func.func @transform_1(%arg0: i32, %arg1: i32) -> (i32, i32, i32, i32) {
    %c1_i32 = arith.constant 1 : i32
    %c0_i32 = arith.constant 0 : i32
    %c0_i32_0 = arith.constant 0 : i32
    return %arg0, %c1_i32, %arg1, %c0_i32 : i32, i32, i32, i32
  }
  func.func @transform_2(%arg0: i32, %arg1: i32) -> (i32, i32, i32, i32) {
    %c0_i32 = arith.constant 0 : i32
    %c0_i32_0 = arith.constant 0 : i32
    %c0_i32_1 = arith.constant 0 : i32
    return %arg0, %c0_i32, %arg1, %c0_i32_0 : i32, i32, i32, i32
  }
  func.func @transform_3(%arg0: i32, %arg1: i32) -> (i32, i32, i32) {
    %c0_i32 = arith.constant 0 : i32
    %c0_i32_0 = arith.constant 0 : i32
    %c0_i32_1 = arith.constant 0 : i32
    return %arg0, %c0_i32, %c0_i32_0 : i32, i32, i32
  }
}

</mosaic_0001>

<bundles_post_ra>
// kernel: tpu_custom_call.1
= control target key start
LH: loop header
LB: loop body
LE: loop exit
PB: predicated region body
PF: predicated region fallthrough
CT: control target
= control target key end

     0   :  { %8 = vsyncpa [#allocation4], 0  ;;  %s970_s0 = inlined_call_operand.hbm [shape: f32[2,2,1,512], index: 0, kind: input, shape index: {}]   ;;  %s971_s1 = inlined_call_operand.hbm [shape: f32[2,2,1,512], index: 1, kind: input, shape index: {}]   ;;  %s972_s2 = inlined_call_operand.hbm [shape: f32[2,2,1,512], index: 2, kind: input, shape index: {}]   ;;  %s973_s3 = inlined_call_operand.vmem [shape: f32[2,1,1], index: 3, kind: output, shape index: {}]  }
   0x1   :  { %10 = vsyncpa [#allocation4 + $0x1], 0 }
   0x2   :  { %11 = vsyncpa [#allocation6], 0 }
   0x3   :  { %13 = vsyncpa [#allocation6 + $0x1], 0  ;;  %s758_s12 = smov 0   ;;  %s760_s13 = smov 0  }
   0x4   :  { %s762_s14 = smov 0   ;;  %s764_s15 = smov 0  }
   0x5   :  { %s766_s16 = smov 0   ;;  %s768_s17 = smov 0  }
   0x6 LB: > { %s975_s18 = sadd.s32 4294967295, %s732_s17   ;;  %s31_s19 = sadd.s32 1, %s728_s16  ;;  %s732_s17 = sphi %s768_s17, %s19_s17   ;;  %s728_s16 = sphi %s766_s16, %s991_s16   ;;  %s724_s15 = sphi %s764_s15, %s990_s15   ;;  %s720_s14 = sphi %s762_s14, %s989_s14   ;;  %s716_s13 = sphi %s760_s13, %s988_s13   ;;  %s712_s12 = sphi %s758_s12, %s987_s12  }
   0x7   : > { %p33_p0 = scmp.ge.s32.totalorder %s31_s19, 2  ;;  %s40_s20 = sadd.s32 1, %s720_s14 }
   0x8   : > { %p47_p1 = scmp.ne.s32.totalorder %s720_s14, %s716_s13  ;;  %p48_p2 = scmp.eq.s32.totalorder %s732_s17, 0 }
   0x9   : > { %s993_s19 = smov (%p33_p0, %s31_s19), 0  ;;  %p53_p4 = scmp.ne.s32.totalorder %s716_s13, %s712_s12 }
   0xa   : > { %p49_p3 = por %p48_p2, %p47_p1  ;;  %s35_s21 = ssub.s32 %s728_s16, %s993_s19 }
   0xb   : > { %p54_p5 = scmp.eq.s32.totalorder %s975_s18, 0  ;;  %p38_p6 = scmp.eq.s32.totalorder %s35_s21, 0 }
   0xc   : > { %p529_p8 = scmp.lt.s32.totalorder %s732_s17, 2  ;;  %s159_s24 = sand.u32 1, %s720_s14  }
   0xd   : > { %p799_p7 = por %p54_p5, %p53_p4  ;;  %s809_s25 = sshll.u32 %s728_s16, 7 }
   0xe   : > { %s805_s23 = scalar_select %p38_p6, %s720_s14, %s40_s20  }
   0xf   : > { %s977_s22 = scalar_select %p799_p7, 1, 0 }
  0x10   : > { %s813_s26 = sshll.u32 %s159_s24, 2  ;;  %p815_p9 = pnand %p529_p8, %p49_p3 }
  0x11   : > { %s180_s28 = sand.u32 1, %s732_s17   ;;  %s407_s4 = scalar_lea.hbm %s971_s1, %s809_s25 }
  0x12   : > { %s978_s27 = scalar_select %p815_p9, 1, 0 }
  0x13   : > { %s184_s5 = scalar_lea.vmem [#allocation5], %s813_s26  ;;  %s825_s7 = scalar_lea.hbm %s407_s4, 64 }
  0x14   : > { %s195_s6 = sshll.u32 %s184_s5, 4  ;;  %s829_s8 = scalar_lea.sflag [#allocation6], %s180_s28  ;;  %s827_s6 = int_to_ptr.vmem [resolvable:$true] %s195_s6 }
  0x15   : > { %s617_s9 = scalar_lea.hbm %s407_s4, 128  ;;  %p834_p11 = pneg %p815_p9 }
  0x16   : > { %p588_p10 = scmp.ne.s32.totalorder %s825_s7, %s617_s9  ;;  %s592_s20 = scalar_lea.hbm %s971_s1, 256 }
  0x17   : > { %p593_p0 = scmp.lt.u32.totalorder %s825_s7, %s971_s1  ;;  %p594_p1 = scmp.lt.u32.totalorder %s592_s20, %s617_s9 }
  0x18   : > { %p590_p12 = pnand %p834_p11, %p588_p10  ;;  %p596_p3 = scmp.lt.u32.totalorder %s617_s9, %s825_s7 }
  0x19   : > { %p595_p2 = por %p594_p1, %p593_p0 }
  0x1a   : > { %p591_p13 = pneg %p590_p12 }
  0x1b   : > { %p597_p4 = por %p596_p3, %p595_p2 }
  0x1d   : > { %p598_p5 = pnand %p597_p4, %p591_p13 }
  0x1f   : > { %601 = shalt.err (!%p598_p5)
}
  0x20   : > { %s602_s28 = scalar_lea.vmem %s827_s6, 64  ;;  %s734_s30 = smov [#allocation5]  }
  0x21   : > { %p603_p6 = scmp.ne.s32.totalorder %s827_s6, %s602_s28  ;;  %s607_s4 = sshll.u32 %s734_s30, 4  ;;  %s608_s4 = int_to_ptr.vmem [resolvable:$false] %s607_s4 }
  0x22   : > { %s609_s5 = scalar_lea.vmem %s608_s4, 128  ;;  %p610_p12 = scmp.lt.s32.totalorder %s827_s6, %s608_s4 }
  0x23   : > { %p605_p8 = pnand %p603_p6, %p834_p11  ;;  %p611_p7 = scmp.lt.s32.totalorder %s609_s5, %s602_s28 }
  0x25   : > { %p606_p10 = pneg %p605_p8  ;;  %p612_p0 = por %p611_p7, %p610_p12 }
  0x27   : > { %p613_p1 = pnand %p612_p0, %p606_p10 }
  0x29   : > { %616 = shalt.err (!%p613_p1)
}
  0x2a   : > { %525 = dma.hbm_to_vmem [thread:$0]  (!%p815_p9), %s825_s7, 64, %s827_s6, %s829_s8  }
  0x2b   : > { %p502_p13 = scmp.ge.s32.totalorder %s732_s17, 1  ;;  %p221_p2 = scmp.lt.s32.totalorder %s732_s17, 3 }
  0x2c   : > { %s868_s20 = scalar_lea.hbm %s970_s0, %s809_s25  ;;  %s163_s21 = scalar_lea.vmem [#allocation3], %s813_s26 }
  0x2d   : > { %p860_p3 = pnand %p502_p13, %p221_p2  ;;  %s173_s29 = sshll.u32 %s163_s21, 4  ;;  %s871_s29 = int_to_ptr.vmem [resolvable:$true] %s173_s29 }
  0x2e   : > { %s877_s28 = scalar_lea.hbm %s972_s2, %s809_s25  ;;  %s160_s30 = scalar_lea.sflag [#allocation4], %s159_s24 }
  0x2f   : > { %s980_s9 = scalar_select %p860_p3, 1, 0 }
  0x30   : > { %s618_s4 = scalar_lea.hbm %s868_s20, 64  ;;  %s623_s12 = scalar_lea.hbm %s970_s0, 256 }
  0x31   : > { %p619_p7 = scmp.ne.s32.totalorder %s868_s20, %s618_s4  ;;  %p624_p6 = scmp.lt.u32.totalorder %s868_s20, %s970_s0 }
  0x32   : > { %p625_p8 = scmp.lt.u32.totalorder %s623_s12, %s618_s4  ;;  %p627_p12 = scmp.lt.u32.totalorder %s618_s4, %s868_s20 }
  0x33   : > { %p621_p4 = pnand %p619_p7, %p834_p11 }
  0x34   : > { %p626_p10 = por %p625_p8, %p624_p6 }
  0x35   : > { %p622_p5 = pneg %p621_p4 }
  0x36   : > { %p628_p0 = por %p627_p12, %p626_p10 }
  0x38   : > { %p629_p1 = pnand %p628_p0, %p622_p5 }
  0x3a   : > { %632 = shalt.err (!%p629_p1)
}
  0x3b   : > { %s633_s24 = scalar_lea.vmem %s871_s29, 64  ;;  %s735_s25 = smov [#allocation3]  }
  0x3c   : > { %p634_p13 = scmp.ne.s32.totalorder %s871_s29, %s633_s24  ;;  %s638_s6 = sshll.u32 %s735_s25, 4  ;;  %s639_s6 = int_to_ptr.vmem [resolvable:$false] %s638_s6 }
  0x3d   : > { %s640_s18 = scalar_lea.vmem %s639_s6, 128  ;;  %p641_p4 = scmp.lt.s32.totalorder %s871_s29, %s639_s6 }
  0x3e   : > { %p636_p2 = pnand %p634_p13, %p834_p11  ;;  %p642_p3 = scmp.lt.s32.totalorder %s640_s18, %s633_s24 }
  0x40   : > { %p637_p7 = pneg %p636_p2  ;;  %p643_p6 = por %p642_p3, %p641_p4 }
  0x42   : > { %p644_p8 = pnand %p643_p6, %p637_p7 }
  0x44   : > { %647 = shalt.err (!%p644_p8)
}
  0x45   : > { %522 = dma.hbm_to_vmem [thread:$0]  (!%p815_p9), %s868_s20, 64, %s871_s29, %s160_s30  }
  0x46   : > { %s206_s7 = scalar_lea.vmem [#allocation7], %s813_s26  ;;  %s648_s5 = scalar_lea.hbm %s877_s28, 64 }
  0x47   : > { %s216_s4 = sshll.u32 %s206_s7, 4  ;;  %p649_p5 = scmp.ne.s32.totalorder %s877_s28, %s648_s5  ;;  %s217_s4 = int_to_ptr.vmem [resolvable:$true] %s216_s4 }
  0x48   : > { %s653_s21 = scalar_lea.hbm %s972_s2, 256  ;;  %p654_p12 = scmp.lt.u32.totalorder %s877_s28, %s972_s2 }
  0x49   : > { %p651_p3 = pnand %p649_p5, %p834_p11  ;;  %p655_p0 = scmp.lt.u32.totalorder %s653_s21, %s648_s5 }
  0x4a   : > { %p657_p13 = scmp.lt.u32.totalorder %s648_s5, %s877_s28 }
  0x4b   : > { %p652_p10 = pneg %p651_p3  ;;  %p656_p1 = por %p655_p0, %p654_p12 }
  0x4d   : > { %p658_p2 = por %p657_p13, %p656_p1 }
  0x4f   : > { %p659_p7 = pnand %p658_p2, %p652_p10 }
  0x51   : > { %662 = shalt.err (!%p659_p7)
}
  0x52   : > { %s663_s26 = scalar_lea.vmem %s217_s4, 64  ;;  %s736_s20 = smov [#allocation7]  }
  0x53   : > { %p664_p4 = scmp.ne.s32.totalorder %s217_s4, %s663_s26  ;;  %s668_s29 = sshll.u32 %s736_s20, 4  ;;  %s669_s29 = int_to_ptr.vmem [resolvable:$false] %s668_s29 }
  0x54   : > { %s670_s30 = scalar_lea.vmem %s669_s29, 128  ;;  %p671_p5 = scmp.lt.s32.totalorder %s217_s4, %s669_s29 }
  0x55   : > { %p666_p6 = pnand %p664_p4, %p834_p11  ;;  %p672_p3 = scmp.lt.s32.totalorder %s670_s30, %s663_s26 }
  0x57   : > { %p667_p8 = pneg %p666_p6  ;;  %p673_p9 = por %p672_p3, %p671_p5 }
  0x59   : > { %p674_p0 = pnand %p673_p9, %p667_p8 }
  0x5b   : > { %677 = shalt.err (!%p674_p0)
}
  0x5c   : > { %p981_p12 = scmp.ne.s32.totalorder %s978_s27, 0  ;;  %p982_p10 = scmp.ne.s32.totalorder %s980_s9, 0 }
  0x5d   : > { %s227_s10 = sand.u32 (!%p982_p10), 1, %s716_s13   ;;  %p983_p11 = scmp.ne.s32.totalorder (!%p982_p10), %s977_s22, 0 }
  0x5e   : > { %528 = dma.hbm_to_vmem [thread:$0]  (!%p981_p12), %s877_s28, 64, %s217_s4, %s829_s8  }
  0x5f   : > { %225 = sbr.rel (%p982_p10) target bundleno = 381 (0x17d), region = 32  ;;  %s924_s6 = sshll.u32 (!%p982_p10), %s227_s10, 2 }
  0x60   : > { %s228_s18 = scalar_lea.sflag (!%p982_p10), [#allocation4], %s227_s10  ;;  %s231_s7 = scalar_lea.vmem (!%p982_p10), [#allocation3], %s924_s6 }
  0x66   : > { %703 = dma.done.wait (%p983_p11), %s228_s18, 64  }
  0x67   : > { %705 = vsyncadd (%p983_p11), %s228_s18, 4294967232  ;;  %s984_s27 = sadd.s32 4294967295, %s732_s17   ;;  %s240_s28 = scalar_lea.vmem [#allocation5], %s924_s6 }
  0x68   : > { %s236_s8 = sand.u32 1, %s984_s27  }
  0x69   : > { %s237_s9 = scalar_lea.sflag [#allocation6], %s236_s8 }
  0x6a   : > { %707 = dma.done.wait (%p983_p11), %s237_s9, 128  }
  0x6b   : > { %709 = vsyncadd (%p983_p11), %s237_s9, 4294967168  ;;  %v287_v0 = vlaneseq  ;;  %v737_v2 = vmov 0.0   ;;  %v293_v3 = vld [vmem:[%s240_s28] sm:$0xf]  ;;  %v292_v16 = vld [vmem:[%s231_s7] sm:$0xf] }
  0x6c   : > { %v296_v4 = vmin.f32 %v293_v3, 20.0  ;;  %vm295_vm2 = vcmp.gt.f32.partialorder %v293_v3, 20.0  ;;  %s249_s22 = scalar_lea.vmem [#allocation7], %s924_s6  ;;  %vm348_vm3 = vcmask 1040384   ;;  %p280_p9 = scmp.lt.s32.totalorder %s724_s15, 1  ;;  %vm367_vm4 = vcmask 0  }
  0x6d   : > { %vm938_vm0 = vcmp.lt.s32.totalorder %v287_v0, 512  ;;  %v294_v17 = vld [vmem:[%s249_s22] sm:$0xf]  ;;  %v329_v27 = vshrl.u32 %v287_v0, 7 }
  0x6e   : > { %291 = vst.msk [vmem:[#allocation2] sm:$0xf] %vm938_vm0, %v737_v2  ;;  %v297_v5 = vmul.f32 1.442695, %v296_v4  ;;  %v309_v18 = vsub.f32 %v294_v17, %v292_v16  ;;  %s995_s15 = smov (!%p280_p9, %s724_s15), 1 }
  0x6f   : > { %v330_v28 = vsub.s32 0, %v329_v27  ;;  %v334_v29 = vsub.s32 1, %v329_v27  ;;  %v338_v30 = vsub.s32 2, %v329_v27  ;;  %v342_v31 = vsub.s32 3, %v329_v27  ;;  %s282_s11 = scalar_lea.vmem %s973_s3, %s995_s15 }
  0x70   : > { %579 = vpow2.f32 %v297_v5  ;;  %v310_v19 = vmul.f32 %v309_v18, %v309_v18 }
  0x75   : > { %v316_v24 = vld [vmem:[#allocation2] sm:$0xf] }
  0x7a   : > { %v580_v6 = vpop.eup %579 }
  0x7b   : > { %v299_v7 = vadd.f32 1.0, %v580_v6  ;;  %v302_v8 = vmul.f32 -0.5, %v580_v6  ;;  %v305_v10 = vand.u32 2147483647, %v580_v6 }
  0x7d   : > { %581 = vlog2.f32 %v299_v7  ;;  %v303_v9 = vadd.f32 1.0, %v302_v8  ;;  %vm306_vm1 = vcmp.lt.f32.partialorder %v305_v10, 0.0004427343 }
  0x7f   : > { %v304_v11 = vmul.f32 %v580_v6, %v303_v9 }
  0x87   : > { %v582_v12 = vpop.eup %581 }
  0x88   : > { %v301_v13 = vmul.f32 0.6931472, %v582_v12 }
  0x8a   : > { %v307_v14 = vsel %vm306_vm1, %v304_v11, %v301_v13 }
  0x8b   : > { %v308_v15 = vsel %vm295_vm2, %v293_v3, %v307_v14 }
  0x8c   : > { %583 = vrcp.f32 %v308_v15 }
  0x8d   : > { %585 = vlog2.f32 %v308_v15 }
  0x96   : > { %v584_v20 = vpop.eup %583 }
  0x97   : > { %v586_v21 = vpop.eup %585  ;;  %v312_v22 = vmul.f32 %v584_v20, %v310_v19 }
  0x98   : > { %v314_v23 = vmul.f32 0.6931472, %v586_v21 }
  0x9a   : > { %v315_v25 = vadd.f32 %v314_v23, %v312_v22 }
  0x9c   : > { %v317_v26 = vadd.f32 %v316_v24, %v315_v25 }
  0x9e   : > { %322 = vst.msk [vmem:[#allocation2] sm:$0xf] %vm938_vm0, %v317_v26 }
  0xa5   : > { %v326_v32 = vld [vmem:[#allocation2] sm:$0xf] }
  0xa6   : > { %v331_v33 = vrot.slane %v326_v32, %v330_v28  ;;  %v335_v34 = vrot.slane %v326_v32, %v334_v29  ;;  %v339_v35 = vrot.slane %v326_v32, %v338_v30  ;;  %v343_v36 = vrot.slane %v326_v32, %v342_v31 }
  0xa8   : > { %v349_v37 = vsel %vm348_vm3, %v331_v33, 0.0  ;;  %v350_v38 = vsel %vm348_vm3, %v335_v34, 0.0  ;;  %v352_v39 = vsel %vm348_vm3, %v339_v35, 0.0  ;;  %v354_v41 = vsel %vm348_vm3, %v343_v36, 0.0 }
  0xa9   : > { %v351_v40 = vadd.f32 %v350_v38, %v349_v37 }
  0xab   : > { %v353_v42 = vadd.f32 %v352_v39, %v351_v40 }
  0xad   : > { %v355_v43 = vadd.f32 %v354_v41, %v353_v42 }
  0xaf   : > { %356 = vadd.xlane.f32.xlu0 %v355_v43 }
 0x13c   : > { %v357_v44 = vpop.xlane.xlu0 %356 }
 0x13d   : > { %v358_v45 = vrot.slane %v357_v44, 4 }
 0x13f   : > { %v359_v46 = vadd.f32 %v358_v45, %v357_v44 }
 0x141   : > { %v360_v47 = vrot.slane %v359_v46, 2 }
 0x143   : > { %v361_v48 = vadd.f32 %v360_v47, %v359_v46 }
 0x145   : > { %v362_v49 = vrot.slane %v361_v48, 1 }
 0x147   : > { %v363_v50 = vadd.f32 %v362_v49, %v361_v48 }
 0x149   : > { %511 = vpush %v363_v50 }
 0x17a   : > { %s512_s12 = spop %511 }
 0x17b   : > { %v365_v51 = vstv %s512_s12 }
 0x17c   : > { %368 = vst.msk [vmem:[%s282_s11] sm:$0x1] %vm367_vm4, %v365_v51 }
 0x17d PF: > { %s19_s17 = sadd.s32 1, %s732_s17   ;;  %s987_s12 = smov %s716_s13 }
 0x17e   : > { %p16_p1 = scmp.ge.s32.totalorder %s19_s17, 4   ;;  %s988_s13 = smov %s720_s14 }
 0x17f   : > { %s989_s14 = smov %s805_s23  ;;  %s990_s15 = smov %s728_s16 }
 0x180   : > { %s991_s16 = smov %s993_s19  ;;  %18 = sbr.rel (!%p16_p1) target bundleno = 6 (0x6), region = 104 }
 0x187   :  { %386 = vsyncpa [#allocation4], 1 }
 0x188   :  { %388 = vsyncpa [#allocation4 + $0x1], 1 }
 0x189   :  { %389 = vsyncpa [#allocation6], 1 }
 0x18a   :  { %391 = vsyncpa [#allocation6 + $0x1], 1 }

</bundles_post_ra>
